<compile_context>
chip_gen: v7x
topology: tpu7x:2x2x1
jax: 0.10.0
libtpu: 0.0.40
codegen_flags: <defaults>
</compile_context>

<pallas_src>
import jax
import jax.numpy as jnp
from jax.experimental import pallas as pl
from jax.experimental.pallas import tpu as pltpu


def _add_add_kernel(bias_ref, a_ref, b_ref, o_ref):
    # bias_ref: SMEM (1,) 32-bit scalar; a/b/o: VMEM (tile_rows, width) tiles.
    o_ref[...] = a_ref[...] + b_ref[...] + bias_ref[0].astype(o_ref.dtype)


def _round_up(x, m):
    return ((x + m - 1) // m) * m


def _vmem_capacity_bytes():
    try:
        return int(pltpu.get_tpu_info().vmem_capacity_bytes)
    except Exception:
        return 64 << 20  # conservative default (v7x per-TensorCore VMEM)


def _choose_layout(n_elems, itemsize):
    """Pick a lane-dense (rows, width) view and a generation-aware tiling.

    width:      largest multiple of 128 (<= 8192) dividing n_elems exactly
                -> free reshape, unmasked full-width vector stores, few long
                DMA descriptors, zero padding.
    tile_rows:  multiple of the dtype's packed sublane minimum (8 f32,
                16 bf16, 32 int8/fp8); per-input tile ~8 MiB on 128 MiB-VMEM
                chips, ~3 MiB on 64 MiB-VMEM chips (v7x), amortizing the
                ~0.35 us per-grid-step overhead while leaving VMEM headroom.
    """
    lane = 128
    sub_min = max(8, 32 // itemsize)

    width = lane
    for cand in (8192, 4096, 2048, 1024, 512, 256):
        if n_elems % cand == 0:
            width = cand
            break
    rows = n_elems // width

    vmem_cap = _vmem_capacity_bytes()
    big_vmem = vmem_cap >= (96 << 20)              # v5e/v6e: 128 MiB; v7x: 64 MiB
    target_tile_bytes = (8 << 20) if big_vmem else (3 << 20)

    rows_cap = max(sub_min,
                   (target_tile_bytes // (width * itemsize)) // sub_min * sub_min)

    if rows <= rows_cap:
        # Whole array as one block: block_shape == full array dims, so the
        # (8,128) divisibility requirement is waived (demo path: (1, 2048)).
        tile_rows, num_tiles = rows, 1
    else:
        tile_rows = rows_cap
        num_tiles = pl.cdiv(rows, tile_rows)
        # Avoid a 3-tile grid: 2:1 imbalance across v7x's two TensorCores on a
        # bandwidth-bound kernel -> prefer 4 slightly smaller tiles.
        if num_tiles == 3:
            tile_rows = max(sub_min, _round_up(pl.cdiv(rows, 4), sub_min))
            num_tiles = pl.cdiv(rows, tile_rows)

    # Give both v7x TensorCores work only when each half is still >= ~1 MiB;
    # on single-TC v5e/v6e this costs at most one extra ~0.35 us grid step.
    if num_tiles == 1 and n_elems * itemsize >= (2 << 20) and rows >= 2 * sub_min:
        tile_rows = _round_up(pl.cdiv(rows, 2), sub_min)
        num_tiles = pl.cdiv(rows, tile_rows)

    tile_bytes = tile_rows * width * itemsize
    # 2 inputs + 1 output, double-buffered, plus headroom; capped safely under
    # the chip's physical VMEM (96 MiB cap on 128 MiB chips, 44 MiB on v7x).
    vmem_budget = max(16 << 20, 6 * tile_bytes + (4 << 20))
    vmem_budget = min(vmem_budget, (96 << 20) if big_vmem else (44 << 20))

    return width, rows, tile_rows, num_tiles, vmem_budget


def not_lowerable_forward(a, b, bias, *, min_pallas_bytes=0, donate_a=False):
    """Computes (a + b) + bias with the hot path in one Pallas TPU kernel."""
    assert a.shape == b.shape
    orig_shape = a.shape
    bias = jnp.asarray(bias)

    # Match torch.add dtype promotion: compute (a + b) + bias in the promoted
    # dtype (no-op casts for the all-f32 module).
    out_dtype = jnp.result_type(a.dtype, b.dtype, bias.dtype)
    a = a.astype(out_dtype)
    b = b.astype(out_dtype)
    bias_flat = bias.astype(out_dtype).reshape(-1)

    if bias_flat.size != 1:
        # TODO(synk): non-scalar broadcast bias is not expressed in the kernel
        # (the tutorial module uses bias = torch.ones(1)); fall back to XLA.
        return (a + b + bias.astype(out_dtype)).reshape(orig_shape)

    n_elems = a.size
    itemsize = jnp.dtype(out_dtype).itemsize

    if n_elems % 128 != 0 or n_elems * itemsize < min_pallas_bytes:
        # Misaligned/tiny sizes: a fused XLA elementwise add is already at the
        # HBM roofline (2 reads + 1 write); padding or prefix-slicing around
        # the kernel would only add full extra HBM passes.
        return (a + b + bias_flat[0]).reshape(orig_shape)

    width, rows, tile_rows, num_tiles, vmem_budget = _choose_layout(n_elems, itemsize)

    # Contiguous row-major reshapes are free (bitcast) — no data movement.
    a2 = a.reshape(rows, width)
    b2 = b.reshape(rows, width)

    # 32-bit SMEM scalar bias; cast to the output dtype inside the kernel.
    smem_dtype = jnp.int32 if jnp.issubdtype(out_dtype, jnp.integer) else jnp.float32
    bias_smem = bias_flat.astype(smem_dtype)

    io_aliases = {1: 0} if donate_a else {}   # reuse a2's HBM buffer for out

    out2 = pl.pallas_call(
        _add_add_kernel,
        out_shape=jax.ShapeDtypeStruct((rows, width), out_dtype),
        grid=(num_tiles,),
        in_specs=[
            pl.BlockSpec(memory_space=pltpu.SMEM),               # bias (1,)
            pl.BlockSpec((tile_rows, width), lambda i: (i, 0)),  # a tile
            pl.BlockSpec((tile_rows, width), lambda i: (i, 0)),  # b tile
        ],
        out_specs=pl.BlockSpec((tile_rows, width), lambda i: (i, 0)),
        compiler_params=pltpu.CompilerParams(
            dimension_semantics=("parallel",),
            vmem_limit_bytes=vmem_budget,
        ),
        cost_estimate=pl.CostEstimate(
            flops=2 * n_elems,
            transcendentals=0,
            bytes_accessed=3 * n_elems * itemsize,
        ),
        input_output_aliases=io_aliases,
    )(bias_smem, a2, b2)

    return out2.reshape(orig_shape)


if __name__ == "__main__":
    key = jax.random.PRNGKey(0)
    ka, kb = jax.random.split(key)

    # Small shapes consistent with the module (pure elementwise): B=2, C=4, H=W=16.
    a = jax.random.normal(ka, (2, 4, 16, 16), dtype=jnp.float32)
    b = jax.random.normal(kb, (2, 4, 16, 16), dtype=jnp.float32)

    # Deterministic parameter: bias = torch.ones(1) as in the tutorial.
    bias = jnp.ones((1,), dtype=jnp.float32)

    out = not_lowerable_forward(a, b, bias)
    out = jax.block_until_ready(out)

    ref = (a + b) + bias  # same as torch.add(torch.add(a, b), bias)
    assert out.shape == a.shape and out.dtype == a.dtype
    assert jnp.allclose(out, ref, atol=1e-6, rtol=1e-6)

    print("KERNEL_OK")
</pallas_src>

<mosaic_0001>
module attributes {stable_mosaic.version = 11 : i64} {
  func.func @_add_add_kernel(%arg0: i32, %arg1: memref<1xf32, #tpu.memory_space<smem>>, %arg2: memref<1x2048xf32, #tpu.memory_space<vmem>>, %arg3: memref<1x2048xf32, #tpu.memory_space<vmem>>, %arg4: memref<1x2048xf32, #tpu.memory_space<vmem>>) attributes {dimension_semantics = [#tpu.dimension_semantics<parallel>], iteration_bounds = array<i64: 1>, scalar_prefetch = 0 : i64, scratch_operands = 0 : i64, tpu.core_type = #tpu.core_type<tc>, window_params = [{transform_indices = @transform_0, window_bounds = array<i64: 1>}, {transform_indices = @transform_1, window_bounds = array<i64: 1, 2048>}, {transform_indices = @transform_2, window_bounds = array<i64: 1, 2048>}, {transform_indices = @transform_3, window_bounds = array<i64: 1, 2048>}]} {
    %c0 = arith.constant 0 : index
    %c0_0 = arith.constant 0 : index
    %0 = vector.load %arg2[%c0, %c0_0] : memref<1x2048xf32, #tpu.memory_space<vmem>>, vector<1x2048xf32>
    %c0_1 = arith.constant 0 : index
    %c0_2 = arith.constant 0 : index
    %1 = vector.load %arg3[%c0_1, %c0_2] : memref<1x2048xf32, #tpu.memory_space<vmem>>, vector<1x2048xf32>
    %2 = arith.addf %0, %1 : vector<1x2048xf32>
    %c0_3 = arith.constant 0 : index
    %3 = memref.load %arg1[%c0_3] : memref<1xf32, #tpu.memory_space<smem>>
    %4 = vector.broadcast %3 : f32 to vector<1x2048xf32>
    %5 = arith.addf %2, %4 : vector<1x2048xf32>
    %c0_4 = arith.constant 0 : index
    %c0_5 = arith.constant 0 : index
    %6 = vector.load %arg4[%c0_4, %c0_5] : memref<1x2048xf32, #tpu.memory_space<vmem>>, vector<1x2048xf32>
    tpu.vector_store %arg4[%c0_4, %c0_5], %5 {strides = array<i32>} : memref<1x2048xf32, #tpu.memory_space<vmem>>, vector<1x2048xf32>,
    return
  }
  func.func @transform_0(%arg0: i32) -> i32 {
    %c0_i32 = arith.constant 0 : i32
    %c0_i32_0 = arith.constant 0 : i32
    return %c0_i32 : i32
  }
  func.func @transform_1(%arg0: i32) -> (i32, i32) {
    %c0_i32 = arith.constant 0 : i32
    %c0_i32_0 = arith.constant 0 : i32
    return %arg0, %c0_i32 : i32, i32
  }
  func.func @transform_2(%arg0: i32) -> (i32, i32) {
    %c0_i32 = arith.constant 0 : i32
    %c0_i32_0 = arith.constant 0 : i32
    return %arg0, %c0_i32 : i32, i32
  }
  func.func @transform_3(%arg0: i32) -> (i32, i32) {
    %c0_i32 = arith.constant 0 : i32
    %c0_i32_0 = arith.constant 0 : i32
    return %arg0, %c0_i32 : i32, i32
  }
}

</mosaic_0001>

<bundles_post_ra>
// kernel: tpu_custom_call.1
= control target key start
LH: loop header
LB: loop body
LE: loop exit
PB: predicated region body
PF: predicated region fallthrough
CT: control target
= control target key end

     0   :  { %9 = vsyncpa [#allocation4], 0  ;;  %s205_s0 = inlined_call_operand.<no memory space> [shape: f32[1], index: 0, kind: input, shape index: {}]   ;;  %s206_s1 = inlined_call_operand.hbm [shape: f32[1,2048], index: 1, kind: input, shape index: {}]   ;;  %s207_s2 = inlined_call_operand.hbm [shape: f32[1,2048], index: 2, kind: input, shape index: {}]   ;;  %s208_s3 = inlined_call_operand.hbm [shape: f32[1,2048], index: 3, kind: output, shape index: {}]  }
   0x1   :  { %10 = vsyncpa [#allocation7], 0 }
   0x2   :  { %11 = vsyncpa [#allocation5], 0  ;;  %s143_s12 = smov [#allocation3]   ;;  %s144_s14 = smov [#allocation6]  }
   0x3   :  { %s20_s13 = sshll.u32 %s143_s12, 4  ;;  %s30_s15 = sshll.u32 %s144_s14, 4  ;;  %s21_s13 = int_to_ptr.vmem [resolvable:$true] %s20_s13  ;;  %s31_s15 = int_to_ptr.vmem [resolvable:$true] %s30_s15 }
   0x4   :  { %s71_s18 = scalar_lea.hbm %s206_s1, 256 }
   0x5   :  { %p72_p0 = scmp.ne.s32.totalorder %s206_s1, %s71_s18  ;;  %p75_p1 = scmp.lt.u32.totalorder %s71_s18, %s206_s1 }
   0x7   :  { %p77_p2 = pnand %p75_p1, %p72_p0 }
   0x9   :  { %80 = shalt.err (!%p77_p2)
}
   0xa   :  { %s81_s23 = scalar_lea.vmem %s21_s13, 256  ;;  %p86_p4 = scmp.lt.s32.totalorder %s21_s13, %s21_s13 }
   0xb   :  { %p82_p3 = scmp.ne.s32.totalorder %s21_s13, %s81_s23  ;;  %p87_p5 = scmp.lt.s32.totalorder %s81_s23, %s81_s23 }
   0xd   :  { %p88_p6 = por %p87_p5, %p86_p4 }
   0xf   :  { %p89_p7 = pnand %p88_p6, %p82_p3 }
  0x11   :  { %92 = shalt.err (!%p89_p7)
}
  0x12   :  { %23 = dma.hbm_to_vmem [thread:$0]  %s206_s1, 256, %s21_s13, [#allocation4]  }
  0x13   :  { %s93_s28 = scalar_lea.hbm %s207_s2, 256 }
  0x14   :  { %p94_p8 = scmp.ne.s32.totalorder %s207_s2, %s93_s28  ;;  %p97_p9 = scmp.lt.u32.totalorder %s93_s28, %s207_s2 }
  0x16   :  { %p99_p10 = pnand %p97_p9, %p94_p8 }
  0x18   :  { %102 = shalt.err (!%p99_p10)
}
  0x19   :  { %s103_s6 = scalar_lea.vmem %s31_s15, 256  ;;  %p108_p12 = scmp.lt.s32.totalorder %s31_s15, %s31_s15 }
  0x1a   :  { %p104_p11 = scmp.ne.s32.totalorder %s31_s15, %s103_s6  ;;  %p109_p13 = scmp.lt.s32.totalorder %s103_s6, %s103_s6 }
  0x1c   :  { %p110_p0 = por %p109_p13, %p108_p12 }
  0x1e   :  { %p111_p1 = pnand %p110_p0, %p104_p11 }
  0x20   :  { %114 = shalt.err (!%p111_p1)
}
  0x21   :  { %33 = dma.hbm_to_vmem [thread:$0]  %s207_s2, 256, %s31_s15, [#allocation7]  }
  0x22   :  { %137 = dma.done.wait [#allocation4], 256  }
  0x23   :  { %138 = vsyncadd [#allocation4], 4294967040 }
  0x24   :  { %139 = dma.done.wait [#allocation7], 256  }
  0x25   :  { %140 = vsyncadd [#allocation7], 4294967040  ;;  %v40_v0 = vld [vmem:[#allocation3] sm:$0xff]  ;;  %v42_v1 = vld [vmem:[#allocation6] sm:$0xff]  ;;  %v47_v2 = vstv %s205_s0  ;;  %s145_s10 = smov [#allocation8]  }
  0x26   :  { %v41_v3 = vld [vmem:[#allocation3 + $0x8] sm:$0xff]  ;;  %v44_v4 = vadd.f32 %v42_v1, %v40_v0  ;;  %v43_v5 = vld [vmem:[#allocation6 + $0x8] sm:$0xff]  ;;  %s58_s11 = sshll.u32 %s145_s10, 4  ;;  %s59_s11 = int_to_ptr.vmem [resolvable:$true] %s58_s11 }
  0x27   :  { %v45_v6 = vadd.f32 %v43_v5, %v41_v3  ;;  %s115_s2 = scalar_lea.vmem %s59_s11, 256  ;;  %p120_p3 = scmp.lt.s32.totalorder %s59_s11, %s59_s11 }
  0x28   :  { %v48_v7 = vadd.f32 %v47_v2, %v44_v4  ;;  %p116_p2 = scmp.ne.s32.totalorder %s59_s11, %s115_s2  ;;  %p121_p4 = scmp.lt.s32.totalorder %s115_s2, %s115_s2 }
  0x29   :  { %v49_v8 = vadd.f32 %v47_v2, %v45_v6 }
  0x2a   :  { %50 = vst [vmem:[#allocation8] sm:$0xff] %v48_v7  ;;  %p122_p5 = por %p121_p4, %p120_p3 }
  0x2b   :  { %51 = vst [vmem:[#allocation8 + $0x8] sm:$0xff] %v49_v8 }
  0x2c   :  { %p123_p6 = pnand %p122_p5, %p116_p2 }
  0x2e   :  { %126 = shalt.err (!%p123_p6)
}
  0x2f   :  { %s127_s13 = scalar_lea.hbm %s208_s3, 256 }
  0x30   :  { %p128_p7 = scmp.ne.s32.totalorder %s208_s3, %s127_s13  ;;  %p131_p8 = scmp.lt.u32.totalorder %s127_s13, %s208_s3 }
  0x32   :  { %p133_p9 = pnand %p131_p8, %p128_p7 }
  0x34   :  { %136 = shalt.err (!%p133_p9)
}
  0x35   :  { %61 = dma.vmem_to_hbm [thread:$0]  %s59_s11, 256, %s208_s3, [#allocation5]  }
  0x36   :  { %141 = dma.done.wait [#allocation5], 256  }
  0x37   :  { %142 = vsyncadd [#allocation5], 4294967040 }
  0x38   :  { %65 = vsyncpa [#allocation4], 1 }
  0x39   :  { %66 = vsyncpa [#allocation7], 1 }
  0x3a   :  { %67 = vsyncpa [#allocation5], 1 }

</bundles_post_ra>
